<compile_context>
chip_gen: v6e
topology: v6e:2x2x1
jax: 0.10.0
libtpu: 0.0.40
codegen_flags: <defaults>
</compile_context>

<pallas_src>
import functools
import math

import jax
import jax.numpy as jnp
from jax.experimental import pallas as pl
from jax.experimental.pallas import tpu as pltpu


# --------------------------- per-chip configuration ---------------------------

def _vmem_capacity_bytes():
    try:
        return int(pltpu.get_tpu_info().vmem_capacity_bytes)
    except Exception:
        # Conservative fallback (assume v7x-sized VMEM) so vmem_limit_bytes can
        # never exceed physical capacity.
        return 64 * 1024 * 1024


_VMEM_CAP = _vmem_capacity_bytes()
_BIG_VMEM = _VMEM_CAP >= 100 * 1024 * 1024            # v5e / v6e (128 MiB)
_VMEM_LIMIT = min((_VMEM_CAP * 3) // 4, 100 * 1024 * 1024)


def _cparams(dimension_semantics):
    return pltpu.CompilerParams(dimension_semantics=dimension_semantics,
                                vmem_limit_bytes=_VMEM_LIMIT)


def _pick_tile(dim, pref, align):
    """Largest tile <= pref that divides dim and is a multiple of align,
    falling back to the full dim (full-extent blocks are always legal)."""
    if dim <= pref:
        return dim
    t = (pref // align) * align
    while t >= align:
        if dim % t == 0:
            return t
        t -= align
    return dim


# --------------------------- tiled linear (matmul) ---------------------------

def _linear_kernel(x_ref, w_ref, b_ref, o_ref, acc_ref):
    @pl.when(pl.program_id(2) == 0)
    def _():
        acc_ref[...] = jnp.zeros_like(acc_ref)

    acc_ref[...] += jnp.dot(x_ref[...], w_ref[...],
                            preferred_element_type=jnp.float32)

    @pl.when(pl.program_id(2) == pl.num_programs(2) - 1)
    def _():
        o_ref[...] = (acc_ref[...] + b_ref[...]).astype(o_ref.dtype)


def pallas_linear(x, w, b):
    """y = x @ w + b; x/w bf16, f32 accumulation, bf16 output."""
    M, K = x.shape
    N = w.shape[1]
    tm = _pick_tile(M, 1024 if _BIG_VMEM else 512, 8)
    tn = _pick_tile(N, 512 if _BIG_VMEM else 256, 128)
    tk = _pick_tile(K, 1024 if _BIG_VMEM else 512, 128)
    return pl.pallas_call(
        _linear_kernel,
        grid=(M // tm, N // tn, K // tk),
        in_specs=[
            pl.BlockSpec((tm, tk), lambda i, j, k: (i, k)),
            pl.BlockSpec((tk, tn), lambda i, j, k: (k, j)),
            pl.BlockSpec((1, tn), lambda i, j, k: (0, j)),
        ],
        out_specs=pl.BlockSpec((tm, tn), lambda i, j, k: (i, j)),
        out_shape=jax.ShapeDtypeStruct((M, N), jnp.bfloat16),
        scratch_shapes=[pltpu.VMEM((tm, tn), jnp.float32)],
        compiler_params=_cparams(("parallel", "parallel", "arbitrary")),
    )(x, w, b.reshape(1, N))


# ------------------------------ LayerNorm helpers ------------------------------

def _ln(x, g, b, eps):
    mean = jnp.mean(x, axis=-1, keepdims=True)
    cen = x - mean
    var = jnp.mean(cen * cen, axis=-1, keepdims=True)
    return cen * jax.lax.rsqrt(var + eps) * g + b


def _layernorm_kernel(x_ref, g_ref, b_ref, o_ref, *, eps):
    o_ref[...] = _ln(x_ref[...].astype(jnp.float32), g_ref[...], b_ref[...],
                     eps).astype(o_ref.dtype)


def pallas_layernorm(x, g, b, eps=1e-12):
    M, H = x.shape
    tm = _pick_tile(M, 1024 if _BIG_VMEM else 512, 8)
    kern = functools.partial(_layernorm_kernel, eps=eps)
    return pl.pallas_call(
        kern,
        grid=(M // tm,),
        in_specs=[
            pl.BlockSpec((tm, H), lambda i: (i, 0)),
            pl.BlockSpec((1, H), lambda i: (0, 0)),
            pl.BlockSpec((1, H), lambda i: (0, 0)),
        ],
        out_specs=pl.BlockSpec((tm, H), lambda i: (i, 0)),
        out_shape=jax.ShapeDtypeStruct((M, H), jnp.bfloat16),
        compiler_params=_cparams(("parallel",)),
    )(x, g.reshape(1, H), b.reshape(1, H))


# ---------------- linear + residual + LayerNorm (attention output) ----------------

def _linear_add_ln_kernel(x_ref, w_ref, b_ref, res_ref, g_ref, beta_ref,
                          o_ref, acc_ref, *, eps):
    @pl.when(pl.program_id(1) == 0)
    def _():
        acc_ref[...] = jnp.zeros_like(acc_ref)

    acc_ref[...] += jnp.dot(x_ref[...], w_ref[...],
                            preferred_element_type=jnp.float32)

    @pl.when(pl.program_id(1) == pl.num_programs(1) - 1)
    def _():
        y = acc_ref[...] + b_ref[...] + res_ref[...].astype(jnp.float32)
        o_ref[...] = _ln(y, g_ref[...], beta_ref[...], eps).astype(o_ref.dtype)


def pallas_linear_add_ln(x, w, b, res, g, beta, eps=1e-12):
    """LayerNorm((x @ w + b) + res); out block spans full H so add+LN fuse into
    the matmul finalize (no standalone add+LN kernel / HBM round-trip)."""
    M, K = x.shape
    N = w.shape[1]
    tm = _pick_tile(M, 512 if _BIG_VMEM else 256, 8)
    tk = _pick_tile(K, 1024 if _BIG_VMEM else 512, 128)
    kern = functools.partial(_linear_add_ln_kernel, eps=eps)
    return pl.pallas_call(
        kern,
        grid=(M // tm, K // tk),
        in_specs=[
            pl.BlockSpec((tm, tk), lambda i, k: (i, k)),
            pl.BlockSpec((tk, N), lambda i, k: (k, 0)),
            pl.BlockSpec((1, N), lambda i, k: (0, 0)),
            pl.BlockSpec((tm, N), lambda i, k: (i, 0)),
            pl.BlockSpec((1, N), lambda i, k: (0, 0)),
            pl.BlockSpec((1, N), lambda i, k: (0, 0)),
        ],
        out_specs=pl.BlockSpec((tm, N), lambda i, k: (i, 0)),
        out_shape=jax.ShapeDtypeStruct((M, N), jnp.bfloat16),
        scratch_shapes=[pltpu.VMEM((tm, N), jnp.float32)],
        compiler_params=_cparams(("parallel", "arbitrary")),
    )(x, w, b.reshape(1, N), res, g.reshape(1, N), beta.reshape(1, N))


# ------------------- fused FFN (matmul+gelu+matmul) + residual + LN -------------------

def _ffn_add_ln_kernel(x_ref, wi_ref, bi_ref, wo_ref, bo_ref, g_ref, beta_ref,
                       o_ref, acc_ref, *, eps):
    @pl.when(pl.program_id(1) == 0)
    def _():
        acc_ref[...] = jnp.zeros_like(acc_ref)

    inter = jnp.dot(x_ref[...], wi_ref[...],
                    preferred_element_type=jnp.float32) + bi_ref[...]
    # TODO(synk): HF BERT uses exact (erf) gelu; tanh approximation here.
    inter = jax.nn.gelu(inter, approximate=True).astype(jnp.bfloat16)
    acc_ref[...] += jnp.dot(inter, wo_ref[...],
                            preferred_element_type=jnp.float32)

    @pl.when(pl.program_id(1) == pl.num_programs(1) - 1)
    def _():
        # residual is the FFN input itself; add + LayerNorm fused in-finalize.
        y = acc_ref[...] + bo_ref[...] + x_ref[...].astype(jnp.float32)
        o_ref[...] = _ln(y, g_ref[...], beta_ref[...], eps).astype(o_ref.dtype)


def pallas_ffn_add_ln(x, wi, bi, wo2, bo2, g, beta, eps=1e-12):
    """LayerNorm(gelu(x @ wi + bi) @ wo2 + bo2 + x); tiled over the intermediate
    dim, the (M, I) intermediate never touches HBM."""
    M, H = x.shape
    I = wi.shape[1]
    tm = _pick_tile(M, 512 if _BIG_VMEM else 256, 8)
    ti = _pick_tile(I, 1024 if _BIG_VMEM else 512, 128)
    kern = functools.partial(_ffn_add_ln_kernel, eps=eps)
    return pl.pallas_call(
        kern,
        grid=(M // tm, I // ti),
        in_specs=[
            pl.BlockSpec((tm, H), lambda i, l: (i, 0)),
            pl.BlockSpec((H, ti), lambda i, l: (0, l)),
            pl.BlockSpec((1, ti), lambda i, l: (0, l)),
            pl.BlockSpec((ti, H), lambda i, l: (l, 0)),
            pl.BlockSpec((1, H), lambda i, l: (0, 0)),
            pl.BlockSpec((1, H), lambda i, l: (0, 0)),
            pl.BlockSpec((1, H), lambda i, l: (0, 0)),
        ],
        out_specs=pl.BlockSpec((tm, H), lambda i, l: (i, 0)),
        out_shape=jax.ShapeDtypeStruct((M, H), jnp.bfloat16),
        scratch_shapes=[pltpu.VMEM((tm, H), jnp.float32)],
        compiler_params=_cparams(("parallel", "arbitrary")),
    )(x, wi, bi.reshape(1, I), wo2, bo2.reshape(1, H),
      g.reshape(1, H), beta.reshape(1, H))


# ------------------------- multi-head self-attention --------------------------

def _heads_per_group(n_heads, head_dim):
    """Smallest head-group size whose context width is 128-lane aligned;
    fall back to all heads (full-extent blocks are always legal)."""
    for g in range(1, n_heads):
        if n_heads % g == 0 and (g * head_dim) % 128 == 0:
            return g
    return n_heads


def _attention_kernel(qkv_ref, attn_ref, ctx_ref, *, heads_per_group, head_dim):
    # qkv block layout (interleaved per head): [q_h | k_h | v_h] for each head
    # of this group. Softmax scale already folded into the Q projection weights.
    qkv = qkv_ref[0]                                     # (S, 3*G*dH) bf16
    parts = []
    for j in range(heads_per_group):
        base = j * 3 * head_dim
        q = qkv[:, base:base + head_dim]
        k = qkv[:, base + head_dim:base + 2 * head_dim]
        v = qkv[:, base + 2 * head_dim:base + 3 * head_dim]
        # NT dot_general: contract last dims directly, no transpose.
        s = jax.lax.dot_general(q, k, (((1,), (1,)), ((), ())),
                                preferred_element_type=jnp.float32)
        m = jnp.max(s, axis=-1, keepdims=True)
        p = jnp.exp(s - m)
        denom = jnp.sum(p, axis=-1, keepdims=True)
        p = p * pl.reciprocal(denom, approx=True)        # EUP slot
        p_lo = p.astype(jnp.bfloat16)                    # bf16 probs (MXU + HBM)
        attn_ref[0, j] = p_lo
        parts.append(jnp.dot(p_lo, v, preferred_element_type=jnp.float32))
    # lane-dense group context write (G*dH is 128-aligned or full H)
    ctx_ref[0] = jnp.concatenate(parts, axis=-1).astype(ctx_ref.dtype)


def pallas_attention(qkv, n_heads, head_dim):
    """qkv: (B, S, 3H) fused, per-head-interleaved projections.
    Returns (attn [B,nH,S,S] bf16, ctx [B,S,H] bf16)."""
    B, S, _ = qkv.shape
    H = n_heads * head_dim
    G = _heads_per_group(n_heads, head_dim)
    n_groups = n_heads // G
    kern = functools.partial(_attention_kernel, heads_per_group=G,
                             head_dim=head_dim)
    attn, ctx = pl.pallas_call(
        kern,
        grid=(B, n_groups),
        in_specs=[pl.BlockSpec((1, S, 3 * G * head_dim), lambda b, g: (b, 0, g))],
        out_specs=(
            pl.BlockSpec((1, G, S, S), lambda b, g: (b, g, 0, 0)),
            pl.BlockSpec((1, S, G * head_dim), lambda b, g: (b, 0, g)),
        ),
        out_shape=(
            jax.ShapeDtypeStruct((B, n_heads, S, S), jnp.bfloat16),
            jax.ShapeDtypeStruct((B, S, H), jnp.bfloat16),
        ),
        compiler_params=_cparams(("parallel", "parallel")),
    )(qkv)
    return attn, ctx


# ------------------------ fused pooler + classifier ---------------------------

def _pool_fc_kernel(cls_ref, wp_ref, bp_ref, wf_ref, bf_ref, o_ref):
    pooled = jnp.tanh(jnp.dot(cls_ref[...], wp_ref[...],
                              preferred_element_type=jnp.float32) + bp_ref[...])
    logits = jnp.dot(pooled.astype(jnp.bfloat16), wf_ref[...],
                     preferred_element_type=jnp.float32) + bf_ref[...]
    o_ref[...] = logits.astype(o_ref.dtype)


def pallas_pool_classifier(cls, wp, bp, wf, bf):
    B, H = cls.shape
    C = wf.shape[1]
    return pl.pallas_call(
        _pool_fc_kernel,
        grid=(1,),
        in_specs=[
            pl.BlockSpec((B, H), lambda i: (0, 0)),
            pl.BlockSpec((H, H), lambda i: (0, 0)),
            pl.BlockSpec((1, H), lambda i: (0, 0)),
            pl.BlockSpec((H, C), lambda i: (0, 0)),
            pl.BlockSpec((1, C), lambda i: (0, 0)),
        ],
        out_specs=pl.BlockSpec((B, C), lambda i: (0, 0)),
        out_shape=jax.ShapeDtypeStruct((B, C), jnp.float32),
        compiler_params=_cparams(("arbitrary",)),
    )(cls, wp, bp.reshape(1, H), wf, bf.reshape(1, C))


# --------------------------- parameter construction --------------------------

def _fuse_qkv(wq, wk, wv, bq, bk, bv, n_heads, head_dim, scale):
    """Interleave per head: columns [q_h | k_h | v_h]; fold softmax scale into Q."""
    H = wq.shape[0]

    def ph(w):
        return w.reshape(H, n_heads, head_dim)

    w = jnp.stack([ph(wq * scale), ph(wk), ph(wv)], axis=2)       # (H, nH, 3, dH)
    w = w.reshape(H, 3 * H)
    b = jnp.stack([(bq * scale).reshape(n_heads, head_dim),
                   bk.reshape(n_heads, head_dim),
                   bv.reshape(n_heads, head_dim)], axis=1).reshape(3 * H)
    return w.astype(jnp.bfloat16), b.astype(jnp.float32)


def init_params(key, vocab_size, max_pos, hidden, n_layers, n_heads,
                intermediate, n_classes=6):
    # TODO(synk): stands in for loading pretrained bert-base-uncased weights.
    dH = hidden // n_heads
    scale = 1.0 / math.sqrt(dH)
    n_keys = 3 + 6 * n_layers + 2
    keys = iter(jax.random.split(key, n_keys))

    def nrm(shape):
        return jax.random.normal(next(keys), shape, jnp.float32) * 0.02

    params = {
        "word_emb": nrm((vocab_size, hidden)),
        "pos_emb": nrm((max_pos, hidden)),
        "type_emb": nrm((2, hidden)),
        "emb_ln_g": jnp.ones((hidden,), jnp.float32),
        "emb_ln_b": jnp.zeros((hidden,), jnp.float32),
        "layers": [],
    }
    for _ in range(n_layers):
        wq, wk, wv = nrm((hidden, hidden)), nrm((hidden, hidden)), nrm((hidden, hidden))
        zeros_h = jnp.zeros((hidden,), jnp.float32)
        w_qkv, b_qkv = _fuse_qkv(wq, wk, wv, zeros_h, zeros_h, zeros_h,
                                 n_heads, dH, scale)
        layer = {
            "w_qkv": w_qkv,                                   # (H, 3H) bf16, interleaved
            "b_qkv": b_qkv,                                   # (3H,) f32
            "wo": nrm((hidden, hidden)).astype(jnp.bfloat16),
            "bo": jnp.zeros((hidden,), jnp.float32),
            "ln1_g": jnp.ones((hidden,), jnp.float32),
            "ln1_b": jnp.zeros((hidden,), jnp.float32),
            "wi": nrm((hidden, intermediate)).astype(jnp.bfloat16),
            "bi": jnp.zeros((intermediate,), jnp.float32),
            "wo2": nrm((intermediate, hidden)).astype(jnp.bfloat16),
            "bo2": jnp.zeros((hidden,), jnp.float32),
            "ln2_g": jnp.ones((hidden,), jnp.float32),
            "ln2_b": jnp.zeros((hidden,), jnp.float32),
        }
        params["layers"].append(layer)
    params["pool_w"] = nrm((hidden, hidden)).astype(jnp.bfloat16)
    params["pool_b"] = jnp.zeros((hidden,), jnp.float32)
    params["fc_w"] = nrm((hidden, n_classes)).astype(jnp.bfloat16)
    params["fc_b"] = jnp.zeros((n_classes,), jnp.float32)
    return params


# -------------------------------- forward pass --------------------------------

def bert_nn_forward(params, input_ids, n_heads):
    B, S = input_ids.shape
    H = params["word_emb"].shape[1]
    dH = H // n_heads

    # --- embeddings (gather is XLA glue; LayerNorm is a Pallas kernel) ---
    emb = (params["word_emb"][input_ids]
           + params["pos_emb"][:S][None, :, :]
           + params["type_emb"][0][None, None, :])            # token_type_ids = 0
    x = pallas_layernorm(emb.reshape(B * S, H),
                         params["emb_ln_g"], params["emb_ln_b"])   # bf16
    # embedding dropout: identity (eval semantics)
    # TODO(synk): no attention mask (all-ones mask assumed, no padding handling).

    attentions = []
    for layer in params["layers"]:
        # fused (and per-head interleaved) QKV projection: one [H, 3H] matmul
        qkv = pallas_linear(x, layer["w_qkv"], layer["b_qkv"])         # (B*S, 3H)
        attn, ctx = pallas_attention(qkv.reshape(B, S, 3 * H), n_heads, dH)
        attentions.append(attn)                                        # (B,nH,S,S) bf16

        # attention output projection + dropout(identity) + residual + LN, fused
        x = pallas_linear_add_ln(ctx.reshape(B * S, H), layer["wo"], layer["bo"],
                                 x, layer["ln1_g"], layer["ln1_b"])

        # FFN (matmul + gelu + matmul) + dropout(identity) + residual + LN, fused
        x = pallas_ffn_add_ln(x, layer["wi"], layer["bi"],
                              layer["wo2"], layer["bo2"],
                              layer["ln2_g"], layer["ln2_b"])

    # --- pooler tanh(dense(CLS)) + dropout(identity) + 6-class classifier, fused ---
    cls = x.reshape(B, S, H)[:, 0, :]                                  # (B, H)
    # TODO(synk): training-mode dropout (p=0.1) not applied; eval() semantics.
    fc_out = pallas_pool_classifier(cls, params["pool_w"], params["pool_b"],
                                    params["fc_w"], params["fc_b"])

    return fc_out, tuple(attentions)


# ------------------------------------ main ------------------------------------

if __name__ == "__main__":
    B, S = 2, 8                 # batch, sequence length
    HIDDEN = 32                 # hidden_size (bert-base is 768; scaled down)
    N_LAYERS = 2
    N_HEADS = 4
    INTERMEDIATE = 64
    VOCAB = 50
    MAX_POS = 16

    key = jax.random.PRNGKey(0)
    k_param, k_ids = jax.random.split(key)

    params = init_params(k_param, VOCAB, MAX_POS, HIDDEN,
                         N_LAYERS, N_HEADS, INTERMEDIATE, n_classes=6)
    input_ids = jax.random.randint(k_ids, (B, S), 0, VOCAB, dtype=jnp.int32)

    fc_out, attentions = bert_nn_forward(params, input_ids, N_HEADS)
    jax.block_until_ready(fc_out)
    for a in attentions:
        jax.block_until_ready(a)

    assert fc_out.shape == (B, 6)
    assert len(attentions) == N_LAYERS
    assert all(a.shape == (B, N_HEADS, S, S) for a in attentions)
    assert bool(jnp.all(jnp.isfinite(fc_out)))
    assert all(bool(jnp.all(jnp.isfinite(a.astype(jnp.float32)))) for a in attentions)
    print("KERNEL_OK")
</pallas_src>

<mosaic_0001>
module attributes {stable_mosaic.version = 11 : i64} {
  func.func @_layernorm_kernel(%arg0: i32, %arg1: memref<16x32xf32, #tpu.memory_space<vmem>>, %arg2: memref<1x32xf32, #tpu.memory_space<vmem>>, %arg3: memref<1x32xf32, #tpu.memory_space<vmem>>, %arg4: memref<16x32xbf16, #tpu.memory_space<vmem>>) attributes {dimension_semantics = [#tpu.dimension_semantics<parallel>], iteration_bounds = array<i64: 1>, scalar_prefetch = 0 : i64, scratch_operands = 0 : i64, tpu.core_type = #tpu.core_type<tc>, window_params = [{transform_indices = @transform_0, window_bounds = array<i64: 16, 32>}, {pipeline_mode = #tpu.pipeline_mode<synchronous>, transform_indices = @transform_1, window_bounds = array<i64: 1, 32>}, {pipeline_mode = #tpu.pipeline_mode<synchronous>, transform_indices = @transform_2, window_bounds = array<i64: 1, 32>}, {transform_indices = @transform_3, window_bounds = array<i64: 16, 32>}]} {
    %c0 = arith.constant 0 : index
    %c0_0 = arith.constant 0 : index
    %0 = vector.load %arg1[%c0, %c0_0] : memref<16x32xf32, #tpu.memory_space<vmem>>, vector<16x32xf32>
    %c0_1 = arith.constant 0 : index
    %c0_2 = arith.constant 0 : index
    %1 = vector.load %arg2[%c0_1, %c0_2] : memref<1x32xf32, #tpu.memory_space<vmem>>, vector<1x32xf32>
    %c0_3 = arith.constant 0 : index
    %c0_4 = arith.constant 0 : index
    %2 = vector.load %arg3[%c0_3, %c0_4] : memref<1x32xf32, #tpu.memory_space<vmem>>, vector<1x32xf32>
    %cst = arith.constant dense<0.000000e+00> : vector<16xf32>
    %3 = vector.multi_reduction <add>, %0, %cst [1] : vector<16x32xf32> to vector<16xf32>
    %4 = vector.shape_cast %3 : vector<16xf32> to vector<16x1xf32>
    %cst_5 = arith.constant 3.200000e+01 : f32
    %5 = vector.broadcast %cst_5 : f32 to vector<16x1xf32>
    %6 = arith.divf %4, %5 : vector<16x1xf32>
    %7 = vector.broadcast %6 : vector<16x1xf32> to vector<16x32xf32>
    %8 = arith.subf %0, %7 : vector<16x32xf32>
    %9 = arith.mulf %8, %8 : vector<16x32xf32>
    %cst_6 = arith.constant dense<0.000000e+00> : vector<16xf32>
    %10 = vector.multi_reduction <add>, %9, %cst_6 [1] : vector<16x32xf32> to vector<16xf32>
    %11 = vector.shape_cast %10 : vector<16xf32> to vector<16x1xf32>
    %cst_7 = arith.constant 3.200000e+01 : f32
    %12 = vector.broadcast %cst_7 : f32 to vector<16x1xf32>
    %13 = arith.divf %11, %12 : vector<16x1xf32>
    %cst_8 = arith.constant 9.99999996E-13 : f32
    %14 = vector.broadcast %cst_8 : f32 to vector<16x1xf32>
    %15 = arith.addf %13, %14 : vector<16x1xf32>
    %16 = math.rsqrt %15 : vector<16x1xf32>
    %17 = vector.broadcast %16 : vector<16x1xf32> to vector<16x32xf32>
    %18 = arith.mulf %8, %17 : vector<16x32xf32>
    %19 = vector.broadcast %1 : vector<1x32xf32> to vector<16x32xf32>
    %20 = arith.mulf %18, %19 : vector<16x32xf32>
    %21 = vector.broadcast %2 : vector<1x32xf32> to vector<16x32xf32>
    %22 = arith.addf %20, %21 : vector<16x32xf32>
    %23 = arith.truncf %22 : vector<16x32xf32> to vector<16x32xbf16>
    %c0_9 = arith.constant 0 : index
    %c0_10 = arith.constant 0 : index
    %24 = vector.load %arg4[%c0_9, %c0_10] : memref<16x32xbf16, #tpu.memory_space<vmem>>, vector<16x32xbf16>
    tpu.vector_store %arg4[%c0_9, %c0_10], %23 {strides = array<i32>} : memref<16x32xbf16, #tpu.memory_space<vmem>>, vector<16x32xbf16>,
    return
  }
  func.func @transform_0(%arg0: i32) -> (i32, i32) {
    %c0_i32 = arith.constant 0 : i32
    %c0_i32_0 = arith.constant 0 : i32
    return %arg0, %c0_i32 : i32, i32
  }
  func.func @transform_1(%arg0: i32) -> (i32, i32) {
    %c0_i32 = arith.constant 0 : i32
    %c0_i32_0 = arith.constant 0 : i32
    %c0_i32_1 = arith.constant 0 : i32
    return %c0_i32, %c0_i32_0 : i32, i32
  }
  func.func @transform_2(%arg0: i32) -> (i32, i32) {
    %c0_i32 = arith.constant 0 : i32
    %c0_i32_0 = arith.constant 0 : i32
    %c0_i32_1 = arith.constant 0 : i32
    return %c0_i32, %c0_i32_0 : i32, i32
  }
  func.func @transform_3(%arg0: i32) -> (i32, i32) {
    %c0_i32 = arith.constant 0 : i32
    %c0_i32_0 = arith.constant 0 : i32
    return %arg0, %c0_i32 : i32, i32
  }
}

</mosaic_0001>

<bundles_post_ra>
// kernel: tpu_custom_call.1
= control target key start
LH: loop header
LB: loop body
LE: loop exit
PB: predicated region body
PF: predicated region fallthrough
CT: control target
= control target key end

     0   :  { %8 = vsyncpa [#allocation3], 0  ;;  %s207_s0 = inlined_call_operand.hbm [shape: f32[16,32], index: 0, kind: input, shape index: {}]   ;;  %s208_s1 = inlined_call_operand.vmem [shape: f32[1,32], index: 1, kind: input, shape index: {}]   ;;  %s209_s2 = inlined_call_operand.vmem [shape: f32[1,32], index: 2, kind: input, shape index: {}]   ;;  %s210_s3 = inlined_call_operand.hbm [shape: bf16[16,32], index: 3, kind: output, shape index: {}]  }
   0x1   :  { %9 = vsyncpa [#allocation4], 0  ;;  %s165_s12 = smov [#allocation2]  }
   0x2   :  { %s15_s13 = sshll.u32 %s165_s12, 4  ;;  %s16_s13 = int_to_ptr.vmem [resolvable:$true] %s15_s13 }
   0x3   :  { %s129_s14 = scalar_lea.vmem %s16_s13, 256  ;;  %p134_p1 = scmp.lt.s32.totalorder %s16_s13, %s16_s13 }
   0x4   :  { %p130_p0 = scmp.ne.s32.totalorder %s16_s13, %s129_s14  ;;  %p135_p2 = scmp.lt.s32.totalorder %s129_s14, %s129_s14 }
   0x6   :  { %p136_p3 = por %p135_p2, %p134_p1 }
   0x8   :  { %p137_p4 = pnand %p136_p3, %p130_p0 }
   0xa   :  { %140 = shalt.err (!%p137_p4)
}
   0xb   :  { %s166_s15 = smov 128   ;;  %s167_s16 = smov 8  }
   0xc   :  { %21 = dma.hbm_to_vmem [thread:$0]  %s207_s0, 256, %s16_s13, [#allocation3], %s166_s15, %s166_s15, %s167_s16  }
   0xd   :  { %161 = dma.done.wait [#allocation3], 256  }
   0xe   :  { %162 = vsyncadd [#allocation3], 4294967040  ;;  %vm33_vm0 = vcmask 261120   ;;  %v29_v0 = vld [vmem:[#allocation2] sm:$0xff]  ;;  %v30_v1 = vld [vmem:[#allocation2 + $0x8] sm:$0xff]  ;;  %vm85_vm1 = vcmask 257024  }
   0xf   :  { %v34_v2 = vsel %vm33_vm0, %v29_v0, 0.0  ;;  %v37_v3 = vsel %vm33_vm0, %v30_v1, 0.0  ;;  %v105_v21 = vld [vmem:[%s208_s1] ss:$0 sm:$0xff]  ;;  %s168_s22 = smov [#allocation5]  }
  0x10   :  { %35 = vadd.xlane.f32.xlu0 %v34_v2  ;;  %v106_v23 = vld [vmem:[%s209_s2] ss:$0 sm:$0xff]  ;;  %s93_s23 = sshll.u32 %s168_s22, 4  ;;  %s94_s23 = int_to_ptr.vmem [resolvable:$true] %s93_s23 }
  0x11   :  { %s141_s1 = scalar_lea.vmem %s94_s23, 128  ;;  %p146_p6 = scmp.lt.s32.totalorder %s94_s23, %s94_s23 }
  0x12   :  { %p142_p5 = scmp.ne.s32.totalorder %s94_s23, %s141_s1  ;;  %p147_p7 = scmp.lt.s32.totalorder %s141_s1, %s141_s1 }
  0x14   :  { %38 = vadd.xlane.f32.xlu0 %v37_v3  ;;  %p148_p8 = por %p147_p7, %p146_p6 }
  0x16   :  { %p149_p9 = pnand %p148_p8, %p142_p5 }
  0x99   :  { %v36_v4 = vpop.xlane.xlu0 %35 }
  0x9a   :  { %v41_v5 = vmul.f32 0.03125, %v36_v4 }
  0x9c   :  { %v43_v6 = vsub.f32 %v29_v0, %v41_v5 }
  0x9d   :  { %v39_v7 = vpop.xlane.xlu0 %38 }
  0x9e   :  { %v42_v8 = vmul.f32 0.03125, %v39_v7  ;;  %v45_v9 = vmul.f32 %v43_v6, %v43_v6 }
  0xa0   :  { %v44_v10 = vsub.f32 %v30_v1, %v42_v8  ;;  %v47_v11 = vsel %vm33_vm0, %v45_v9, 0.0 }
  0xa1   :  { %48 = vadd.xlane.f32.xlu1 %v47_v11 }
  0xa2   :  { %v46_v12 = vmul.f32 %v44_v10, %v44_v10 }
  0xa4   :  { %v50_v13 = vsel %vm33_vm0, %v46_v12, 0.0 }
  0xa5   :  { %51 = vadd.xlane.f32.xlu1 %v50_v13 }
 0x12a   :  { %v49_v14 = vpop.xlane.xlu1 %48 }
 0x12b   :  { %v53_v15 = vmul.f32 0.03125, %v49_v14 }
 0x12d   :  { %v55_v16 = vadd.f32 1e-12, %v53_v15 }
 0x12e   :  { %v52_v17 = vpop.xlane.xlu1 %51 }
 0x12f   :  { %117 = vrsqrt.f32 %v55_v16  ;;  %v54_v18 = vmul.f32 0.03125, %v52_v17 }
 0x131   :  { %v56_v19 = vadd.f32 1e-12, %v54_v18 }
 0x133   :  { %119 = vrsqrt.f32 %v56_v19 }
 0x13c   :  { %v118_v20 = vpop.eup %117 }
 0x13d   :  { %v59_v22 = vmul.f32 %v118_v20, %v43_v6 }
 0x13f   :  { %v67_v24 = vmul.f32 %v105_v21, %v59_v22 }
 0x140   :  { %v120_v25 = vpop.eup %119 }
 0x141   :  { %v60_v26 = vmul.f32 %v120_v25, %v44_v10  ;;  %v75_v27 = vadd.f32 %v106_v23, %v67_v24 }
 0x143   :  { %v68_v28 = vmul.f32 %v105_v21, %v60_v26  ;;  %v109_v29 = vpack.c.bf16 %v75_v27, %v75_v27 }
 0x145   :  { %v76_v30 = vadd.f32 %v106_v23, %v68_v28  ;;  %86 = vst.msk [vmem:[#allocation5] sm:$0xf] %vm85_vm1, %v109_v29 }
 0x147   :  { %v110_v31 = vpack.c.bf16 %v76_v30, %v76_v30 }
 0x149   :  { %87 = vst.msk [vmem:[#allocation5 + $0x4] sm:$0xf] %vm85_vm1, %v110_v31 }
 0x14a   :  { %152 = shalt.err (!%p149_p9)
}
 0x14b   :  { %s169_s2 = smov 64   ;;  %s170_s24 = smov 4  }
 0x14c   :  { %99 = dma.vmem_to_hbm [thread:$0]  %s94_s23, 128, %s210_s3, [#allocation4], %s169_s2, %s169_s2, %s170_s24  }
 0x14d   :  { %163 = dma.done.wait [#allocation4], 128  }
 0x14e   :  { %164 = vsyncadd [#allocation4], 4294967168 }
 0x14f   :  { %103 = vsyncpa [#allocation3], 1 }
 0x150   :  { %104 = vsyncpa [#allocation4], 1 }

</bundles_post_ra>
